<compile_context>
chip_gen: v7x
topology: tpu7x:2x2x1
jax: 0.10.0
libtpu: 0.0.40
codegen_flags: <defaults>
</compile_context>

<pallas_src>
import functools

import jax
import jax.numpy as jnp
from jax.experimental import pallas as pl
from jax.experimental.pallas import tpu as pltpu

LANE = 128     # TPU lane width  (batch axis maps to lanes)
SUBLANE = 8    # TPU sublane width (action axis padded to this)


def _round_up(x, m):
    return m * (-(-x // m))


def actor_td3_kernel(s_ref,
                     w1_ref, b1_ref,
                     w2_ref, b2_ref,
                     w3_ref, b3_ref,
                     w4_ref, b4_ref,
                     out_ref):
    """One batch tile of the actor MLP, computed in [features, batch] layout.

    Weights are bf16 in PyTorch's native [out, in] layout; biases are f32 [out, 1].
    All accumulation and elementwise math (ReLU / Hardswish / tanh) stays in f32
    (v5e's VPU/EUP have no bf16); MXU operands are bf16 with f32 accumulation.
    """
    x = s_ref[...].astype(jnp.bfloat16)                                     # [S, TB]

    # Linear + ReLU
    h = jnp.dot(w1_ref[...], x, preferred_element_type=jnp.float32) + b1_ref[...]
    h = jnp.maximum(h, 0.0)                                                 # [M, TB]

    # Linear + ReLU
    h = jnp.dot(w2_ref[...], h.astype(jnp.bfloat16),
                preferred_element_type=jnp.float32) + b2_ref[...]
    h = jnp.maximum(h, 0.0)

    # Linear + Hardswish:  x * clamp(x + 3, 0, 6) / 6
    h = jnp.dot(w3_ref[...], h.astype(jnp.bfloat16),
                preferred_element_type=jnp.float32) + b3_ref[...]
    h = h * jnp.minimum(jnp.maximum(h + 3.0, 0.0), 6.0) * (1.0 / 6.0)

    # Final Linear (sublane-padded action rows) + Tanh, then the module's extra .tanh().
    # Only A8 (=8) rows -> the double tanh and the store run over 8*TB elements.
    z = jnp.dot(w4_ref[...], h.astype(jnp.bfloat16),
                preferred_element_type=jnp.float32) + b4_ref[...]           # [A8, TB]
    out_ref[...] = jnp.tanh(jnp.tanh(z)).astype(out_ref.dtype)


@functools.partial(jax.jit, static_argnames=("action_dim", "block_b", "num_cores"))
def actor_td3_forward(state, params, *, action_dim, block_b=512, num_cores=1):
    """action = tanh(tanh(MLP(state))).  state: [B, S] f32 -> [B, action_dim] f32.

    num_cores: pass 2 on v7x so the "parallel" batch grid axis covers both
    TensorCores; leave 1 on v5e/v6e so the grid collapses to the fewest steps
    (per-grid-step overhead dominates at these problem sizes).
    """
    (w1, b1, w2, b2, w3, b3, w4, b4) = params
    B, S = state.shape
    M = w1.shape[0]
    A8 = w4.shape[0]                      # sublane-padded action dim (multiple of 8)

    # Batch tile: lane-dense (multiple of 128), as large as block_b allows (fewest
    # grid steps), but keep at least `num_cores` steps so megacore can split them.
    TB = min(_round_up(block_b, LANE),
             _round_up(pl.cdiv(B, num_cores), LANE))
    grid_b = pl.cdiv(B, TB)
    Bp = grid_b * TB

    # Transposed, batch-padded input: [S, Bp].  S stays 12 -- do NOT lane-pad it.
    state_t = state.T
    if Bp != B:
        state_t = jnp.pad(state_t, ((0, 0), (0, Bp - B)))

    weights = (w1, b1, w2, b2, w3, b3, w4, b4)
    weight_bytes = sum(int(p.size) * p.dtype.itemsize for p in weights)
    # Constant index_maps -> each weight/bias is DMA'd once and stays VMEM-resident.
    weight_specs = [pl.BlockSpec(p.shape, lambda i: (0, 0)) for p in weights]

    # VMEM budget: double-buffered state/out blocks + resident weights + generous
    # allowance for the f32/bf16 [M, TB] intermediates.  Capped at 64 MiB (v7x physical).
    vmem_est = (2 * (S * TB * 4 + A8 * TB * 4)
                + 2 * weight_bytes
                + 10 * M * TB * 4)
    vmem_limit = int(min(64 << 20, max(16 << 20, 2 * vmem_est)))

    # Advisory cost for XLA's scheduler around the custom call.
    flops = 2 * Bp * (S * M + M * M + M * M + M * A8)
    transcendentals = 2 * Bp * A8                    # two tanh passes over 8 rows only
    bytes_accessed = (int(state_t.size) * state_t.dtype.itemsize
                      + weight_bytes
                      + Bp * A8 * 4)

    out_t = pl.pallas_call(
        actor_td3_kernel,
        out_shape=jax.ShapeDtypeStruct((A8, Bp), jnp.float32),
        grid=(grid_b,),
        in_specs=[pl.BlockSpec((S, TB), lambda i: (0, i))] + weight_specs,
        out_specs=pl.BlockSpec((A8, TB), lambda i: (0, i)),
        compiler_params=pltpu.CompilerParams(
            dimension_semantics=("parallel",),        # v7x megacore; no-op on 1-TC chips
            vmem_limit_bytes=vmem_limit),
        cost_estimate=pl.CostEstimate(
            flops=flops,
            transcendentals=transcendentals,
            bytes_accessed=bytes_accessed),
    )(state_t, *weights)

    return out_t[:action_dim, :B].T                   # [B, action_dim]


def init_params(key, state_dim, action_dim, mid_dim, sublane=SUBLANE):
    """PyTorch-Linear-style init.  Weights kept in PyTorch's [out, in] layout (bf16
    for the MXU); biases f32 [out, 1].  The final layer's out-dim is zero-padded to a
    multiple of 8 sublanes (the wrapper slices it away)."""
    a_pad = _round_up(action_dim, sublane)
    shapes = [
        (mid_dim, state_dim),    # net.0
        (mid_dim, mid_dim),      # net.2
        (mid_dim, mid_dim),      # net.4
        (action_dim, mid_dim),   # net.6
    ]
    raw = []
    for fan_out, fan_in in shapes:
        key, kw, kb = jax.random.split(key, 3)
        bound = 1.0 / jnp.sqrt(jnp.float32(fan_in))
        w = jax.random.uniform(kw, (fan_out, fan_in), jnp.float32, -bound, bound)
        b = jax.random.uniform(kb, (fan_out,), jnp.float32, -bound, bound)
        raw.append((w, b))

    # Zero-pad the output layer's rows: tanh(tanh(0)) = 0 in the padded region.
    w4, b4 = raw[-1]
    raw[-1] = (jnp.pad(w4, ((0, a_pad - action_dim), (0, 0))),
               jnp.pad(b4, ((0, a_pad - action_dim),)))

    flat = []
    for w, b in raw:
        flat.append(w.astype(jnp.bfloat16))            # bf16 weights for the MXU
        flat.append(b.reshape(-1, 1))                  # f32 bias, [out, 1] lane-broadcast
    return tuple(flat)


def reference_forward(state, params, action_dim):
    """Pure-JAX reference mimicking the kernel's bf16-operand / f32-accumulate matmuls."""
    (w1, b1, w2, b2, w3, b3, w4, b4) = params

    def mm(x, w):                                      # x [B, in], w [out, in] bf16
        return jnp.dot(x.astype(jnp.bfloat16), w.T, preferred_element_type=jnp.float32)

    h = jax.nn.relu(mm(state, w1) + b1.T)
    h = jax.nn.relu(mm(h, w2) + b2.T)
    h = mm(h, w3) + b3.T
    h = h * jnp.clip(h + 3.0, 0.0, 6.0) / 6.0          # Hardswish
    z = mm(h, w4) + b4.T
    return jnp.tanh(jnp.tanh(z))[:, :action_dim]


if __name__ == "__main__":
    # Small shapes consistent with the module; B=256 -> TB=256, grid=1 by default.
    batch, state_dim, action_dim, mid_dim = 256, 12, 4, 128

    key = jax.random.PRNGKey(0)
    key, ks, kp = jax.random.split(key, 3)
    state = jax.random.normal(ks, (batch, state_dim), jnp.float32)
    params = init_params(kp, state_dim, action_dim, mid_dim)

    # TODO(synk): get_actions() adds clipped uniform exploration noise outside forward();
    # not part of the forward pass, so it is left to the caller (jax.random on the host).
    act = actor_td3_forward(state, params, action_dim=action_dim)
    act = jax.block_until_ready(act)

    act_ref = reference_forward(state, params, action_dim)
    assert act.shape == (batch, action_dim)
    assert bool(jnp.all(jnp.isfinite(act)))
    max_diff = float(jnp.max(jnp.abs(act - act_ref)))
    assert jnp.allclose(act, act_ref, atol=2e-3, rtol=2e-3), f"mismatch: {max_diff}"

    print("KERNEL_OK")
</pallas_src>

<mosaic_0001>
module attributes {stable_mosaic.version = 11 : i64} {
  func.func @actor_td3_kernel(%arg0: i32, %arg1: memref<12x256xf32, #tpu.memory_space<vmem>>, %arg2: memref<128x12xbf16, #tpu.memory_space<vmem>>, %arg3: memref<128x1xf32, #tpu.memory_space<vmem>>, %arg4: memref<128x128xbf16, #tpu.memory_space<vmem>>, %arg5: memref<128x1xf32, #tpu.memory_space<vmem>>, %arg6: memref<128x128xbf16, #tpu.memory_space<vmem>>, %arg7: memref<128x1xf32, #tpu.memory_space<vmem>>, %arg8: memref<8x128xbf16, #tpu.memory_space<vmem>>, %arg9: memref<8x1xf32, #tpu.memory_space<vmem>>, %arg10: memref<8x256xf32, #tpu.memory_space<vmem>>) attributes {dimension_semantics = [#tpu.dimension_semantics<parallel>], iteration_bounds = array<i64: 1>, scalar_prefetch = 0 : i64, scratch_operands = 0 : i64, tpu.core_type = #tpu.core_type<tc>, window_params = [{transform_indices = @transform_0, window_bounds = array<i64: 12, 256>}, {pipeline_mode = #tpu.pipeline_mode<synchronous>, transform_indices = @transform_1, window_bounds = array<i64: 128, 12>}, {pipeline_mode = #tpu.pipeline_mode<synchronous>, transform_indices = @transform_2, window_bounds = array<i64: 128, 1>}, {pipeline_mode = #tpu.pipeline_mode<synchronous>, transform_indices = @transform_3, window_bounds = array<i64: 128, 128>}, {pipeline_mode = #tpu.pipeline_mode<synchronous>, transform_indices = @transform_4, window_bounds = array<i64: 128, 1>}, {pipeline_mode = #tpu.pipeline_mode<synchronous>, transform_indices = @transform_5, window_bounds = array<i64: 128, 128>}, {pipeline_mode = #tpu.pipeline_mode<synchronous>, transform_indices = @transform_6, window_bounds = array<i64: 128, 1>}, {pipeline_mode = #tpu.pipeline_mode<synchronous>, transform_indices = @transform_7, window_bounds = array<i64: 8, 128>}, {pipeline_mode = #tpu.pipeline_mode<synchronous>, transform_indices = @transform_8, window_bounds = array<i64: 8, 1>}, {transform_indices = @transform_9, window_bounds = array<i64: 8, 256>}]} {
    %c0 = arith.constant 0 : index
    %c0_0 = arith.constant 0 : index
    %0 = vector.load %arg1[%c0, %c0_0] : memref<12x256xf32, #tpu.memory_space<vmem>>, vector<12x256xf32>
    %1 = arith.truncf %0 : vector<12x256xf32> to vector<12x256xbf16>
    %c0_1 = arith.constant 0 : index
    %c0_2 = arith.constant 0 : index
    %2 = vector.load %arg2[%c0_1, %c0_2] : memref<128x12xbf16, #tpu.memory_space<vmem>>, vector<128x12xbf16>
    %cst = arith.constant dense<0.000000e+00> : vector<128x256xf32>
    %3 = tpu.matmul %2, %1, %cst {dimension_numbers = #tpu.dot_dimension_numbers<[1], [0], [0], [1], [0, 0, 1, 1], [], []>} : vector<128x12xbf16>, vector<12x256xbf16>, vector<128x256xf32> -> vector<128x256xf32>
    %c0_3 = arith.constant 0 : index
    %c0_4 = arith.constant 0 : index
    %4 = vector.load %arg3[%c0_3, %c0_4] : memref<128x1xf32, #tpu.memory_space<vmem>>, vector<128x1xf32>
    %5 = vector.broadcast %4 : vector<128x1xf32> to vector<128x256xf32>
    %6 = arith.addf %3, %5 : vector<128x256xf32>
    %cst_5 = arith.constant 0.000000e+00 : f32
    %7 = vector.broadcast %cst_5 : f32 to vector<128x256xf32>
    %8 = arith.maximumf %6, %7 : vector<128x256xf32>
    %c0_6 = arith.constant 0 : index
    %c0_7 = arith.constant 0 : index
    %9 = vector.load %arg4[%c0_6, %c0_7] : memref<128x128xbf16, #tpu.memory_space<vmem>>, vector<128x128xbf16>
    %10 = arith.truncf %8 : vector<128x256xf32> to vector<128x256xbf16>
    %cst_8 = arith.constant dense<0.000000e+00> : vector<128x256xf32>
    %11 = tpu.matmul %9, %10, %cst_8 {dimension_numbers = #tpu.dot_dimension_numbers<[1], [0], [0], [1], [0, 0, 1, 1], [], []>} : vector<128x128xbf16>, vector<128x256xbf16>, vector<128x256xf32> -> vector<128x256xf32>
    %c0_9 = arith.constant 0 : index
    %c0_10 = arith.constant 0 : index
    %12 = vector.load %arg5[%c0_9, %c0_10] : memref<128x1xf32, #tpu.memory_space<vmem>>, vector<128x1xf32>
    %13 = vector.broadcast %12 : vector<128x1xf32> to vector<128x256xf32>
    %14 = arith.addf %11, %13 : vector<128x256xf32>
    %cst_11 = arith.constant 0.000000e+00 : f32
    %15 = vector.broadcast %cst_11 : f32 to vector<128x256xf32>
    %16 = arith.maximumf %14, %15 : vector<128x256xf32>
    %c0_12 = arith.constant 0 : index
    %c0_13 = arith.constant 0 : index
    %17 = vector.load %arg6[%c0_12, %c0_13] : memref<128x128xbf16, #tpu.memory_space<vmem>>, vector<128x128xbf16>
    %18 = arith.truncf %16 : vector<128x256xf32> to vector<128x256xbf16>
    %cst_14 = arith.constant dense<0.000000e+00> : vector<128x256xf32>
    %19 = tpu.matmul %17, %18, %cst_14 {dimension_numbers = #tpu.dot_dimension_numbers<[1], [0], [0], [1], [0, 0, 1, 1], [], []>} : vector<128x128xbf16>, vector<128x256xbf16>, vector<128x256xf32> -> vector<128x256xf32>
    %c0_15 = arith.constant 0 : index
    %c0_16 = arith.constant 0 : index
    %20 = vector.load %arg7[%c0_15, %c0_16] : memref<128x1xf32, #tpu.memory_space<vmem>>, vector<128x1xf32>
    %21 = vector.broadcast %20 : vector<128x1xf32> to vector<128x256xf32>
    %22 = arith.addf %19, %21 : vector<128x256xf32>
    %cst_17 = arith.constant 3.000000e+00 : f32
    %23 = vector.broadcast %cst_17 : f32 to vector<128x256xf32>
    %24 = arith.addf %22, %23 : vector<128x256xf32>
    %cst_18 = arith.constant 0.000000e+00 : f32
    %25 = vector.broadcast %cst_18 : f32 to vector<128x256xf32>
    %26 = arith.maximumf %24, %25 : vector<128x256xf32>
    %cst_19 = arith.constant 6.000000e+00 : f32
    %27 = vector.broadcast %cst_19 : f32 to vector<128x256xf32>
    %28 = arith.minimumf %26, %27 : vector<128x256xf32>
    %29 = arith.mulf %22, %28 : vector<128x256xf32>
    %cst_20 = arith.constant 0.166666672 : f32
    %30 = vector.broadcast %cst_20 : f32 to vector<128x256xf32>
    %31 = arith.mulf %29, %30 : vector<128x256xf32>
    %c0_21 = arith.constant 0 : index
    %c0_22 = arith.constant 0 : index
    %32 = vector.load %arg8[%c0_21, %c0_22] : memref<8x128xbf16, #tpu.memory_space<vmem>>, vector<8x128xbf16>
    %33 = arith.truncf %31 : vector<128x256xf32> to vector<128x256xbf16>
    %cst_23 = arith.constant dense<0.000000e+00> : vector<8x256xf32>
    %34 = tpu.matmul %32, %33, %cst_23 {dimension_numbers = #tpu.dot_dimension_numbers<[1], [0], [0], [1], [0, 0, 1, 1], [], []>} : vector<8x128xbf16>, vector<128x256xbf16>, vector<8x256xf32> -> vector<8x256xf32>
    %c0_24 = arith.constant 0 : index
    %c0_25 = arith.constant 0 : index
    %35 = vector.load %arg9[%c0_24, %c0_25] : memref<8x1xf32, #tpu.memory_space<vmem>>, vector<8x1xf32>
    %36 = vector.broadcast %35 : vector<8x1xf32> to vector<8x256xf32>
    %37 = arith.addf %34, %36 : vector<8x256xf32>
    %38 = math.tanh %37 : vector<8x256xf32>
    %39 = math.tanh %38 : vector<8x256xf32>
    %c0_26 = arith.constant 0 : index
    %c0_27 = arith.constant 0 : index
    %40 = vector.load %arg10[%c0_26, %c0_27] : memref<8x256xf32, #tpu.memory_space<vmem>>, vector<8x256xf32>
    tpu.vector_store %arg10[%c0_26, %c0_27], %39 {strides = array<i32>} : memref<8x256xf32, #tpu.memory_space<vmem>>, vector<8x256xf32>,
    return
  }
  func.func @transform_0(%arg0: i32) -> (i32, i32) {
    %c0_i32 = arith.constant 0 : i32
    %c0_i32_0 = arith.constant 0 : i32
    return %c0_i32, %arg0 : i32, i32
  }
  func.func @transform_1(%arg0: i32) -> (i32, i32) {
    %c0_i32 = arith.constant 0 : i32
    %c0_i32_0 = arith.constant 0 : i32
    %c0_i32_1 = arith.constant 0 : i32
    return %c0_i32, %c0_i32_0 : i32, i32
  }
  func.func @transform_2(%arg0: i32) -> (i32, i32) {
    %c0_i32 = arith.constant 0 : i32
    %c0_i32_0 = arith.constant 0 : i32
    %c0_i32_1 = arith.constant 0 : i32
    return %c0_i32, %c0_i32_0 : i32, i32
  }
  func.func @transform_3(%arg0: i32) -> (i32, i32) {
    %c0_i32 = arith.constant 0 : i32
    %c0_i32_0 = arith.constant 0 : i32
    %c0_i32_1 = arith.constant 0 : i32
    return %c0_i32, %c0_i32_0 : i32, i32
  }
  func.func @transform_4(%arg0: i32) -> (i32, i32) {
    %c0_i32 = arith.constant 0 : i32
    %c0_i32_0 = arith.constant 0 : i32
    %c0_i32_1 = arith.constant 0 : i32
    return %c0_i32, %c0_i32_0 : i32, i32
  }
  func.func @transform_5(%arg0: i32) -> (i32, i32) {
    %c0_i32 = arith.constant 0 : i32
    %c0_i32_0 = arith.constant 0 : i32
    %c0_i32_1 = arith.constant 0 : i32
    return %c0_i32, %c0_i32_0 : i32, i32
  }
  func.func @transform_6(%arg0: i32) -> (i32, i32) {
    %c0_i32 = arith.constant 0 : i32
    %c0_i32_0 = arith.constant 0 : i32
    %c0_i32_1 = arith.constant 0 : i32
    return %c0_i32, %c0_i32_0 : i32, i32
  }
  func.func @transform_7(%arg0: i32) -> (i32, i32) {
    %c0_i32 = arith.constant 0 : i32
    %c0_i32_0 = arith.constant 0 : i32
    %c0_i32_1 = arith.constant 0 : i32
    return %c0_i32, %c0_i32_0 : i32, i32
  }
  func.func @transform_8(%arg0: i32) -> (i32, i32) {
    %c0_i32 = arith.constant 0 : i32
    %c0_i32_0 = arith.constant 0 : i32
    %c0_i32_1 = arith.constant 0 : i32
    return %c0_i32, %c0_i32_0 : i32, i32
  }
  func.func @transform_9(%arg0: i32) -> (i32, i32) {
    %c0_i32 = arith.constant 0 : i32
    %c0_i32_0 = arith.constant 0 : i32
    return %c0_i32, %arg0 : i32, i32
  }
}

</mosaic_0001>

<bundles_post_ra>
// kernel: actor_td3_forward.1
= control target key start
LH: loop header
LB: loop body
LE: loop exit
PB: predicated region body
PF: predicated region fallthrough
CT: control target
= control target key end

     0   :  { %vm216_vm0 = vcmask 1045504   ;;  %v1282_v3 = vmov 0   ;;  %vm191_vm1 = vcmask 97280   ;;  %s1639_s0 = inlined_call_operand.vmem [shape: f32[12,256], index: 0, kind: input, shape index: {}]   ;;  %s1640_s2 = inlined_call_operand.vmem [shape: f32[128,1], index: 2, kind: input, shape index: {}]   ;;  %s1641_s1 = inlined_call_operand.vmem [shape: bf16[128,12], index: 1, kind: input, shape index: {}]   ;;  %s1642_s4 = inlined_call_operand.vmem [shape: f32[128,1], index: 4, kind: input, shape index: {}]   ;;  %s1643_s6 = inlined_call_operand.vmem [shape: f32[128,1], index: 6, kind: input, shape index: {}]   ;;  %s1644_s8 = inlined_call_operand.vmem [shape: f32[8,1], index: 8, kind: input, shape index: {}]   ;;  %s1645_s3 = inlined_call_operand.vmem [shape: bf16[128,128], index: 3, kind: input, shape index: {}]   ;;  %s1646_s5 = inlined_call_operand.vmem [shape: bf16[128,128], index: 5, kind: input, shape index: {}]   ;;  %s1647_s7 = inlined_call_operand.vmem [shape: bf16[8,128], index: 7, kind: input, shape index: {}]   ;;  %s1648_s9 = inlined_call_operand.vmem [shape: f32[8,256], index: 9, kind: output, shape index: {}]  }
   0x1   :  { %v34_v0 = vld [vmem:[%s1639_s0 + $0x8] sm:$0xff]  ;;  %v36_v1 = vld [vmem:[%s1639_s0 + $0x18] sm:$0xf]  ;;  %v33_v2 = vld [vmem:[%s1639_s0] sm:$0xff]  ;;  %1248 = vset.pattern.permute.xlu0 %v1282_v3  ;;  %255 = vmatprep.mubr.bf16.mxu0 %v1282_v3 }
   0x2   :  { %v38_v4 = vpack.c.bf16 %v36_v1, %v34_v0  ;;  %v35_v5 = vld [vmem:[%s1639_s0 + $0x10] sm:$0xf]  ;;  %295 = vmatprep.mubr.bf16.mxu1 %v1282_v3  ;;  %v55_v6 = vld [vmem:[%s1640_s2] sm:$0xff]  ;;  %1249 = vset.pattern.permute.xlu1 %v1282_v3  ;;  %v56_v9 = vld [vmem:[%s1640_s2 + $0x8] sm:$0xff] }
   0x3   :  { %v37_v7 = vpack.c.bf16 %v35_v5, %v33_v2  ;;  %73 = vperm.xlu0 %1248, %v55_v6   ;;  %v1250_v8 = vld [vmem:[%s1641_s1] sm:$0xff]   ;;  %v57_v12 = vld [vmem:[%s1640_s2 + $0x10] sm:$0xff]  ;;  %v58_v14 = vld [vmem:[%s1640_s2 + $0x18] sm:$0xff] }
   0x4   :  { %1220 = vmatprep.subr.msk.bf16.mxu0 %vm216_vm0, %v38_v4  ;;  %1245 = vmatprep.subr.msk.bf16.mxu1 %vm216_vm0, %v38_v4  ;;  %v1251_v11 = vld [vmem:[%s1641_s1 + $0x20] sm:$0xff]   ;;  %v1252_v15 = vld [vmem:[%s1641_s1 + $0x8] sm:$0xff]   ;;  %v61_v16 = vld [vmem:[%s1640_s2 + $0x30] sm:$0xff] }
   0x5   :  { %v218_v10 = vsel %vm216_vm0, %v37_v7, 0  ;;  %83 = vperm.xlu1 %1249, %v57_v12   ;;  %v59_v13 = vld [vmem:[%s1640_s2 + $0x20] sm:$0xff]  ;;  %v60_v17 = vld [vmem:[%s1640_s2 + $0x28] sm:$0xff]  ;;  %v62_v20 = vld [vmem:[%s1640_s2 + $0x38] sm:$0xff] }
   0x6   :  { %224 = vmatpush1.bf16.msra.mxu0 %v218_v10  ;;  %1246 = vmatpush1.bf16.msra.mxu1 %v218_v10  ;;  %v1253_v18 = vld [vmem:[%s1641_s1 + $0x28] sm:$0xff]   ;;  %v63_v19 = vld [vmem:[%s1640_s2 + $0x40] sm:$0xff]  ;;  %v65_v21 = vld [vmem:[%s1640_s2 + $0x50] sm:$0xff] }
   0x7   :  { %78 = vperm.xlu0 %1248, %v56_v9   ;;  %v64_v22 = vld [vmem:[%s1640_s2 + $0x48] sm:$0xff]  ;;  %v1254_v23 = vld [vmem:[%s1641_s1 + $0x10] sm:$0xff]   ;;  %v67_v25 = vld [vmem:[%s1640_s2 + $0x60] sm:$0xff] }
   0x8   :  { %v1255_v24 = vld [vmem:[%s1641_s1 + $0x30] sm:$0xff]   ;;  %v66_v26 = vld [vmem:[%s1640_s2 + $0x58] sm:$0xff]  ;;  %v68_v28 = vld [vmem:[%s1640_s2 + $0x68] sm:$0xff] }
   0x9   :  { %1221 = vmatmul.mubr.msk.bf16.vlgmr.msra.gmra.mrb[0].mxu0 %vm191_vm1, %v1250_v8  ;;  %1225 = vmatmul.mubr.msk.bf16.vlgmr.msra.gmra.mrb[0].mxu1 %vm191_vm1, %v1251_v11  ;;  %v69_v27 = vld [vmem:[%s1640_s2 + $0x70] sm:$0xff]  ;;  %v1256_v29 = vld [vmem:[%s1641_s1 + $0x18] sm:$0xff]   ;;  %v400_v31 = vld [vmem:[%s1642_s4] sm:$0xff] }
   0xa   :  { %265 = vmatprep.mubr.bf16.mxu0 %v1282_v3  ;;  %305 = vmatprep.mubr.bf16.mxu1 %v1282_v3  ;;  %v1257_v30 = vld [vmem:[%s1641_s1 + $0x38] sm:$0xff]   ;;  %v402_v33 = vld [vmem:[%s1642_s4 + $0x10] sm:$0xff]  ;;  %v401_v34 = vld [vmem:[%s1642_s4 + $0x8] sm:$0xff] }
   0xb   :  { %93 = vperm.xlu0 %1248, %v59_v13   ;;  %88 = vperm.xlu1 %1249, %v58_v14   ;;  %v70_v32 = vld [vmem:[%s1640_s2 + $0x78] sm:$0xff]  ;;  %v404_v35 = vld [vmem:[%s1642_s4 + $0x20] sm:$0xff]  ;;  %v406_v37 = vld [vmem:[%s1642_s4 + $0x30] sm:$0xff] }
   0xc   :  { %v403_v36 = vld [vmem:[%s1642_s4 + $0x18] sm:$0xff]  ;;  %v405_v38 = vld [vmem:[%s1642_s4 + $0x28] sm:$0xff]  ;;  %v408_v39 = vld [vmem:[%s1642_s4 + $0x40] sm:$0xff] }
   0xd   :  { %v407_v40 = vld [vmem:[%s1642_s4 + $0x38] sm:$0xff]  ;;  %v410_v41 = vld [vmem:[%s1642_s4 + $0x50] sm:$0xff]  ;;  %v409_v42 = vld [vmem:[%s1642_s4 + $0x48] sm:$0xff] }
   0xe   :  { %v412_v43 = vld [vmem:[%s1642_s4 + $0x60] sm:$0xff]  ;;  %v411_v44 = vld [vmem:[%s1642_s4 + $0x58] sm:$0xff]  ;;  %v414_v45 = vld [vmem:[%s1642_s4 + $0x70] sm:$0xff] }
   0xf   :  { %103 = vperm.xlu0 %1248, %v61_v16   ;;  %98 = vperm.xlu1 %1249, %v60_v17   ;;  %v413_v46 = vld [vmem:[%s1642_s4 + $0x68] sm:$0xff]  ;;  %v721_v47 = vld [vmem:[%s1643_s6] sm:$0xff]  ;;  %v415_v48 = vld [vmem:[%s1642_s4 + $0x78] sm:$0xff] }
  0x10   :  { %v723_v49 = vld [vmem:[%s1643_s6 + $0x10] sm:$0xff]  ;;  %v722_v50 = vld [vmem:[%s1643_s6 + $0x8] sm:$0xff]  ;;  %v725_v51 = vld [vmem:[%s1643_s6 + $0x20] sm:$0xff] }
  0x11   :  { %1222 = vmatmul.mubr.msk.bf16.gmra.mrb[4].mxu0 %vm191_vm1, %v1252_v15  ;;  %1226 = vmatmul.mubr.msk.bf16.gmra.mrb[4].mxu1 %vm191_vm1, %v1253_v18  ;;  %v724_v52 = vld [vmem:[%s1643_s6 + $0x18] sm:$0xff]  ;;  %v727_v53 = vld [vmem:[%s1643_s6 + $0x30] sm:$0xff]  ;;  %v726_v54 = vld [vmem:[%s1643_s6 + $0x28] sm:$0xff] }
  0x12   :  { %275 = vmatprep.mubr.bf16.mxu0 %v1282_v3  ;;  %315 = vmatprep.mubr.bf16.mxu1 %v1282_v3  ;;  %v729_v55 = vld [vmem:[%s1643_s6 + $0x40] sm:$0xff]  ;;  %v728_v56 = vld [vmem:[%s1643_s6 + $0x38] sm:$0xff]  ;;  %v731_v57 = vld [vmem:[%s1643_s6 + $0x50] sm:$0xff] }
  0x13   :  { %113 = vperm.xlu0 %1248, %v63_v19   ;;  %108 = vperm.xlu1 %1249, %v62_v20   ;;  %v730_v58 = vld [vmem:[%s1643_s6 + $0x48] sm:$0xff]  ;;  %v733_v59 = vld [vmem:[%s1643_s6 + $0x60] sm:$0xff]  ;;  %v732_v60 = vld [vmem:[%s1643_s6 + $0x58] sm:$0xff] }
  0x14   :  { %v735_v61 = vld [vmem:[%s1643_s6 + $0x70] sm:$0xff]  ;;  %v734_v62 = vld [vmem:[%s1643_s6 + $0x68] sm:$0xff]  ;;  %v1155_v63 = vld [vmem:[%s1644_s8] sm:$0xff] }
  0x15   :  { %v736_v0 = vld [vmem:[%s1643_s6 + $0x78] sm:$0xff] }
  0x17   :  { %123 = vperm.xlu0 %1248, %v65_v21   ;;  %118 = vperm.xlu1 %1249, %v64_v22  }
  0x19   :  { %1223 = vmatmul.mubr.msk.bf16.gmra.mrb[8].mxu0 %vm191_vm1, %v1254_v23  ;;  %1227 = vmatmul.mubr.msk.bf16.gmra.mrb[8].mxu1 %vm191_vm1, %v1255_v24 }
  0x1a   :  { %285 = vmatprep.mubr.bf16.mxu0 %v1282_v3  ;;  %325 = vmatprep.mubr.bf16.mxu1 %v1282_v3 }
  0x1b   :  { %133 = vperm.xlu0 %1248, %v67_v25   ;;  %128 = vperm.xlu1 %1249, %v66_v26  }
  0x1f   :  { %143 = vperm.xlu0 %1248, %v69_v27   ;;  %138 = vperm.xlu1 %1249, %v68_v28  }
  0x21   :  { %1224 = vmatmul.mubr.msk.bf16.gmra.mrb[12].mxu0 %vm191_vm1, %v1256_v29  ;;  %1228 = vmatmul.mubr.msk.bf16.gmra.mrb[12].mxu1 %vm191_vm1, %v1257_v30 }
  0x22   :  { %576 = vmatprep.mubr.bf16.mxu1 %v1282_v3  ;;  %897 = vmatprep.mubr.bf16.mxu0 %v1282_v3 }
  0x23   :  { %418 = vperm.xlu0 %1248, %v400_v31   ;;  %148 = vperm.xlu1 %1249, %v70_v32  }
  0x27   :  { %428 = vperm.xlu0 %1248, %v402_v33   ;;  %423 = vperm.xlu1 %1249, %v401_v34  }
  0x2b   :  { %438 = vperm.xlu0 %1248, %v404_v35   ;;  %433 = vperm.xlu1 %1249, %v403_v36  }
  0x2f   :  { %448 = vperm.xlu0 %1248, %v406_v37   ;;  %443 = vperm.xlu1 %1249, %v405_v38  }
  0x33   :  { %458 = vperm.xlu0 %1248, %v408_v39   ;;  %453 = vperm.xlu1 %1249, %v407_v40  }
  0x37   :  { %468 = vperm.xlu0 %1248, %v410_v41   ;;  %463 = vperm.xlu1 %1249, %v409_v42  }
  0x3b   :  { %478 = vperm.xlu0 %1248, %v412_v43   ;;  %473 = vperm.xlu1 %1249, %v411_v44  }
  0x3f   :  { %488 = vperm.xlu0 %1248, %v414_v45   ;;  %483 = vperm.xlu1 %1249, %v413_v46  }
  0x43   :  { %739 = vperm.xlu0 %1248, %v721_v47   ;;  %493 = vperm.xlu1 %1249, %v415_v48  }
  0x47   :  { %749 = vperm.xlu0 %1248, %v723_v49   ;;  %744 = vperm.xlu1 %1249, %v722_v50  }
  0x4b   :  { %759 = vperm.xlu0 %1248, %v725_v51   ;;  %754 = vperm.xlu1 %1249, %v724_v52  }
  0x4f   :  { %769 = vperm.xlu0 %1248, %v727_v53   ;;  %764 = vperm.xlu1 %1249, %v726_v54  }
  0x53   :  { %779 = vperm.xlu0 %1248, %v729_v55   ;;  %774 = vperm.xlu1 %1249, %v728_v56  }
  0x57   :  { %789 = vperm.xlu0 %1248, %v731_v57   ;;  %784 = vperm.xlu1 %1249, %v730_v58  }
  0x5b   :  { %799 = vperm.xlu0 %1248, %v733_v59   ;;  %794 = vperm.xlu1 %1249, %v732_v60  }
  0x5f   :  { %809 = vperm.xlu0 %1248, %v735_v61   ;;  %804 = vperm.xlu1 %1249, %v734_v62  }
  0x63   :  { %1158 = vperm.xlu0 %1248, %v1155_v63   ;;  %814 = vperm.xlu1 %1249, %v736_v0  }
  0x82   :  { %v74_v1 = vpop.permute.xlu0 %73 }
  0x84   :  { %v84_v2 = vpop.permute.xlu1 %83 }
  0x86   :  { %v79_v4 = vpop.permute.xlu0 %78 }
  0x8a   :  { %v89_v5 = vpop.permute.xlu1 %88  ;;  %v1539_v6 = vpop.permute.xlu0 %93 }
  0x8e   :  { %v1541_v7 = vpop.permute.xlu1 %98  ;;  %v1543_v8 = vpop.permute.xlu0 %103 }
  0x92   :  { %v1545_v9 = vpop.permute.xlu1 %108  ;;  %v114_v10 = vpop.permute.xlu0 %113 }
  0x96   :  { %v119_v11 = vpop.permute.xlu1 %118  ;;  %v124_v35 = vpop.permute.xlu0 %123 }
  0x9a   :  { %v129_v36 = vpop.permute.xlu1 %128 }
  0xdc   :  { %v257_v12 = vpop.f32.mrb[0].mxu0  ;;  %v297_v13 = vpop.f32.mrb[0].mxu1 }
  0xdd   :  { %v258_v14 = vadd.f32 %v257_v12, %v74_v1  ;;  %v259_v15 = vpop.f32.mrb[1].mxu0  ;;  %v298_v16 = vadd.f32 %v297_v13, %v114_v10  ;;  %v299_v17 = vpop.f32.mrb[1].mxu1 }
  0xde   :  { %v260_v18 = vadd.f32 %v259_v15, %v74_v1  ;;  %v261_v19 = vpop.f32.mrb[2].mxu0  ;;  %v300_v20 = vadd.f32 %v299_v17, %v114_v10  ;;  %v301_v21 = vpop.f32.mrb[2].mxu1 }
  0xdf   :  { %v262_v22 = vadd.f32 %v261_v19, %v79_v4  ;;  %v263_v23 = vpop.f32.mrb[3].mxu0  ;;  %v352_v24 = vmax.f32 %v298_v16, 0.0  ;;  %v302_v25 = vadd.f32 %v301_v21, %v119_v11  ;;  %v336_v26 = vmax.f32 %v258_v14, 0.0  ;;  %v303_v28 = vpop.f32.mrb[3].mxu1 }
  0xe0   :  { %v264_v27 = vadd.f32 %v263_v23, %v79_v4  ;;  %v353_v30 = vmax.f32 %v300_v20, 0.0  ;;  %v304_v32 = vadd.f32 %v303_v28, %v119_v11  ;;  %v337_v33 = vmax.f32 %v260_v18, 0.0  ;;  %v139_v4 = vpop.permute.xlu1 %138 }
  0xe1   :  { %v338_v29 = vmax.f32 %v262_v22, 0.0  ;;  %v354_v31 = vmax.f32 %v302_v25, 0.0 }
  0xe2   :  { %v339_v34 = vmax.f32 %v264_v27, 0.0  ;;  %v355_v39 = vmax.f32 %v304_v32, 0.0 }
  0xe3   :  { %v384_v37 = vpack.c.bf16 %v338_v29, %v336_v26  ;;  %v1547_v38 = vpack.c.bf16 %v354_v31, %v352_v24 }
  0xe4   :  { %v385_v40 = vpack.c.bf16 %v339_v34, %v337_v33  ;;  %v267_v41 = vpop.f32.mrb[4].mxu0  ;;  %v307_v42 = vpop.f32.mrb[4].mxu1  ;;  %v1549_v43 = vpack.c.bf16 %v355_v39, %v353_v30 }
  0xe5   :  { %v268_v44 = vadd.f32 %v267_v41, %v84_v2  ;;  %v308_v45 = vadd.f32 %v307_v42, %v124_v35  ;;  %v269_v46 = vpop.f32.mrb[5].mxu0  ;;  %v309_v47 = vpop.f32.mrb[5].mxu1 }
  0xe6   :  { %v270_v48 = vadd.f32 %v269_v46, %v84_v2  ;;  %v310_v49 = vadd.f32 %v309_v47, %v124_v35  ;;  %v271_v50 = vpop.f32.mrb[6].mxu0  ;;  %v311_v51 = vpop.f32.mrb[6].mxu1  ;;  %544 = vmatprep.subr.bf16.mxu1 %v385_v40 }
  0xe7   :  { %v356_v52 = vmax.f32 %v308_v45, 0.0  ;;  %v272_v53 = vadd.f32 %v271_v50, %v89_v5  ;;  %v312_v54 = vadd.f32 %v311_v51, %v129_v36  ;;  %v273_v55 = vpop.f32.mrb[7].mxu0  ;;  %v313_v56 = vpop.f32.mrb[7].mxu1  ;;  %545 = vmatpush1.bf16.msra.mxu1 %v384_v37  ;;  %v340_v60 = vmax.f32 %v268_v44, 0.0 }
  0xe8   :  { %v357_v57 = vmax.f32 %v310_v49, 0.0  ;;  %v274_v58 = vadd.f32 %v273_v55, %v89_v5  ;;  %v314_v59 = vadd.f32 %v313_v56, %v129_v36  ;;  %v341_v63 = vmax.f32 %v270_v48, 0.0  ;;  %v134_v2 = vpop.permute.xlu0 %133  ;;  %v149_v37 = vpop.permute.xlu1 %148 }
  0xe9   :  { %v342_v61 = vmax.f32 %v272_v53, 0.0  ;;  %v358_v62 = vmax.f32 %v312_v54, 0.0 }
  0xea   :  { %v343_v0 = vmax.f32 %v274_v58, 0.0  ;;  %v359_v1 = vmax.f32 %v314_v59, 0.0 }
  0xeb   :  { %v386_v10 = vpack.c.bf16 %v342_v61, %v340_v60  ;;  %v1551_v11 = vpack.c.bf16 %v358_v62, %v356_v52 }
  0xec   :  { %v387_v12 = vpack.c.bf16 %v343_v0, %v341_v63  ;;  %v1553_v13 = vpack.c.bf16 %v359_v1, %v357_v57  ;;  %v277_v14 = vpop.f32.mrb[8].mxu0  ;;  %v317_v15 = vpop.f32.mrb[8].mxu1 }
  0xed   :  { %v278_v16 = vadd.f32 %v277_v14, %v1539_v6  ;;  %v318_v5 = vadd.f32 %v317_v15, %v134_v2  ;;  %v279_v17 = vpop.f32.mrb[9].mxu0  ;;  %v319_v18 = vpop.f32.mrb[9].mxu1  ;;  %v1263_v14 = vld [vmem:[%s1645_s3 + $0x28] sm:$0xff]   ;;  %v1264_v15 = vld [vmem:[%s1645_s3 + $0x30] sm:$0xff]  }
  0xee   :  { %v280_v19 = vadd.f32 %v279_v17, %v1539_v6  ;;  %v320_v20 = vadd.f32 %v319_v18, %v134_v2  ;;  %v281_v21 = vpop.f32.mrb[10].mxu0  ;;  %v321_v22 = vpop.f32.mrb[10].mxu1  ;;  %546 = vmatprep.subr.bf16.mxu1 %v387_v12 }
  0xef   :  { %v282_v23 = vadd.f32 %v281_v21, %v1541_v7  ;;  %v322_v24 = vadd.f32 %v321_v22, %v139_v4  ;;  %v283_v25 = vpop.f32.mrb[11].mxu0  ;;  %v323_v26 = vpop.f32.mrb[11].mxu1  ;;  %547 = vmatpush1.bf16.msra.mxu1 %v386_v10  ;;  %v344_v29 = vmax.f32 %v278_v16, 0.0  ;;  %v360_v30 = vmax.f32 %v318_v5, 0.0  ;;  %v1265_v16 = vld [vmem:[%s1645_s3 + $0x38] sm:$0xff]  }
  0xf0   :  { %v284_v27 = vadd.f32 %v283_v25, %v1541_v7  ;;  %v324_v28 = vadd.f32 %v323_v26, %v139_v4  ;;  %v345_v33 = vmax.f32 %v280_v19, 0.0  ;;  %v361_v34 = vmax.f32 %v320_v20, 0.0  ;;  %v144_v36 = vpop.permute.xlu0 %143  ;;  %v424_v20 = vpop.permute.xlu1 %423 }
  0xf1   :  { %v346_v31 = vmax.f32 %v282_v23, 0.0  ;;  %v362_v32 = vmax.f32 %v322_v24, 0.0 }
  0xf2   :  { %v347_v6 = vmax.f32 %v284_v27, 0.0  ;;  %v363_v35 = vmax.f32 %v324_v28, 0.0 }
  0xf3   :  { %v388_v39 = vpack.c.bf16 %v346_v31, %v344_v29  ;;  %v396_v40 = vpack.c.bf16 %v362_v32, %v360_v30 }
  0xf4   :  { %v389_v41 = vpack.c.bf16 %v347_v6, %v345_v33  ;;  %v397_v42 = vpack.c.bf16 %v363_v35, %v361_v34  ;;  %v287_v44 = vpop.f32.mrb[12].mxu0  ;;  %v327_v45 = vpop.f32.mrb[12].mxu1 }
  0xf5   :  { %v288_v46 = vadd.f32 %v287_v44, %v1543_v8  ;;  %v328_v7 = vadd.f32 %v327_v45, %v144_v36  ;;  %v289_v47 = vpop.f32.mrb[13].mxu0  ;;  %v329_v48 = vpop.f32.mrb[13].mxu1 }
  0xf6   :  { %v290_v49 = vadd.f32 %v289_v47, %v1543_v8  ;;  %v330_v50 = vadd.f32 %v329_v48, %v144_v36  ;;  %v291_v51 = vpop.f32.mrb[14].mxu0  ;;  %v331_v52 = vpop.f32.mrb[14].mxu1  ;;  %548 = vmatprep.subr.bf16.mxu1 %v389_v41 }
  0xf7   :  { %v292_v53 = vadd.f32 %v291_v51, %v1545_v9  ;;  %v332_v54 = vadd.f32 %v331_v52, %v149_v37  ;;  %v293_v55 = vpop.f32.mrb[15].mxu0  ;;  %v333_v56 = vpop.f32.mrb[15].mxu1  ;;  %549 = vmatpush1.bf16.msra.mxu1 %v388_v39  ;;  %v348_v59 = vmax.f32 %v288_v46, 0.0  ;;  %v364_v60 = vmax.f32 %v328_v7, 0.0 }
  0xf8   :  { %v294_v57 = vadd.f32 %v293_v55, %v1545_v9  ;;  %v334_v58 = vadd.f32 %v333_v56, %v149_v37  ;;  %v349_v63 = vmax.f32 %v290_v49, 0.0  ;;  %v365_v0 = vmax.f32 %v330_v50, 0.0  ;;  %v1258_v9 = vld [vmem:[%s1645_s3] sm:$0xff]   ;;  %v419_v5 = vpop.permute.xlu0 %418  ;;  %v434_v35 = vpop.permute.xlu1 %433 }
  0xf9   :  { %v350_v61 = vmax.f32 %v292_v53, 0.0  ;;  %v366_v62 = vmax.f32 %v332_v54, 0.0 }
  0xfa   :  { %v351_v8 = vmax.f32 %v294_v57, 0.0  ;;  %v367_v1 = vmax.f32 %v334_v58, 0.0 }
  0xfb   :  { %v390_v2 = vpack.c.bf16 %v350_v61, %v348_v59  ;;  %v398_v4 = vpack.c.bf16 %v366_v62, %v364_v60 }
  0xfc   :  { %v391_v10 = vpack.c.bf16 %v351_v8, %v349_v63  ;;  %v399_v12 = vpack.c.bf16 %v367_v1, %v365_v0  ;;  %v429_v31 = vpop.permute.xlu0 %428  ;;  %v444_v52 = vpop.permute.xlu1 %443 }
  0xfe   :  { %550 = vmatprep.subr.bf16.mxu1 %v391_v10 }
  0xff   :  { %551 = vmatpush1.bf16.msra.mxu1 %v390_v2 }
 0x100   :  { %552 = vmatprep.subr.bf16.mxu1 %v1549_v43  ;;  %v1259_v43 = vld [vmem:[%s1645_s3 + $0x8] sm:$0xff]   ;;  %v439_v47 = vpop.permute.xlu0 %438 }
 0x103   :  { %553 = vmatpush1.bf16.msra.mxu1 %v1547_v38  ;;  %v1260_v38 = vld [vmem:[%s1645_s3 + $0x10] sm:$0xff]  }
 0x104   :  { %554 = vmatprep.subr.bf16.mxu1 %v1553_v13  ;;  %v1262_v13 = vld [vmem:[%s1645_s3 + $0x20] sm:$0xff]   ;;  %v449_v63 = vpop.permute.xlu0 %448 }
 0x107   :  { %555 = vmatpush1.bf16.msra.mxu1 %v1551_v11  ;;  %v1261_v11 = vld [vmem:[%s1645_s3 + $0x18] sm:$0xff]  }
 0x108   :  { %556 = vmatprep.subr.bf16.mxu1 %v397_v42 }
 0x10b   :  { %557 = vmatpush1.bf16.msra.mxu1 %v396_v40 }
 0x10c   :  { %558 = vmatprep.subr.bf16.mxu1 %v399_v12 }
 0x10f   :  { %559 = vmatpush1.bf16.msra.mxu1 %v398_v4  ;;  %v454_v4 = vpop.permute.xlu1 %453 }
 0x112   :  { %577 = vmatmul.mubr.bf16.vlgmr.msra.gmra.mrb[16].mxu1 %v1258_v9 }
 0x113   :  { %586 = vmatprep.mubr.bf16.mxu1 %v1282_v3 }
 0x11a   :  { %587 = vmatmul.mubr.bf16.gmra.mrb[20].mxu1 %v1259_v43 }
 0x11b   :  { %596 = vmatprep.mubr.bf16.mxu1 %v1282_v3 }
 0x122   :  { %597 = vmatmul.mubr.bf16.gmra.mrb[24].mxu1 %v1260_v38 }
 0x123   :  { %606 = vmatprep.mubr.bf16.mxu1 %v1282_v3 }
 0x12a   :  { %607 = vmatmul.mubr.bf16.gmra.mrb[28].mxu1 %v1261_v11 }
 0x12b   :  { %616 = vmatprep.mubr.bf16.mxu1 %v1282_v3 }
 0x132   :  { %617 = vmatmul.mubr.bf16.gmra.mrb[32].mxu1 %v1262_v13 }
 0x133   :  { %626 = vmatprep.mubr.bf16.mxu1 %v1282_v3 }
 0x13a   :  { %627 = vmatmul.mubr.bf16.gmra.mrb[36].mxu1 %v1263_v14 }
 0x13b   :  { %636 = vmatprep.mubr.bf16.mxu1 %v1282_v3 }
 0x142   :  { %637 = vmatmul.mubr.bf16.gmra.mrb[40].mxu1 %v1264_v15 }
 0x143   :  { %646 = vmatprep.mubr.bf16.mxu1 %v1282_v3 }
 0x14a   :  { %647 = vmatmul.mubr.bf16.gmra.mrb[44].mxu1 %v1265_v16 }
 0x14b   :  { %1193 = vmatprep.mubr.bf16.mxu1 %v1282_v3 }
 0x1e5   :  { %v578_v17 = vpop.f32.mrb[16].mxu1 }
 0x1e6   :  { %v579_v18 = vadd.f32 %v578_v17, %v419_v5  ;;  %v580_v19 = vpop.f32.mrb[17].mxu1 }
 0x1e7   :  { %v581_v21 = vadd.f32 %v580_v19, %v419_v5  ;;  %v582_v22 = vpop.f32.mrb[18].mxu1  ;;  %v459_v5 = vpop.permute.xlu0 %458 }
 0x1e8   :  { %v583_v23 = vadd.f32 %v582_v22, %v424_v20  ;;  %v584_v24 = vpop.f32.mrb[19].mxu1  ;;  %v657_v26 = vmax.f32 %v579_v18, 0.0 }
 0x1e9   :  { %v585_v25 = vadd.f32 %v584_v24, %v424_v20  ;;  %v658_v28 = vmax.f32 %v581_v21, 0.0  ;;  %v464_v21 = vpop.permute.xlu1 %463 }
 0x1ea   :  { %v659_v27 = vmax.f32 %v583_v23, 0.0 }
 0x1eb   :  { %v660_v29 = vmax.f32 %v585_v25, 0.0 }
 0x1ec   :  { %v705_v30 = vpack.c.bf16 %v659_v27, %v657_v26 }
 0x1ed   :  { %v706_v32 = vpack.c.bf16 %v660_v29, %v658_v28  ;;  %v588_v33 = vpop.f32.mrb[20].mxu1 }
 0x1ee   :  { %v589_v34 = vadd.f32 %v588_v33, %v429_v31  ;;  %v590_v6 = vpop.f32.mrb[21].mxu1 }
 0x1ef   :  { %v591_v36 = vadd.f32 %v590_v6, %v429_v31  ;;  %v592_v37 = vpop.f32.mrb[22].mxu1  ;;  %865 = vmatprep.subr.bf16.mxu0 %v706_v32  ;;  %v469_v32 = vpop.permute.xlu0 %468 }
 0x1f0   :  { %v593_v39 = vadd.f32 %v592_v37, %v434_v35  ;;  %v594_v40 = vpop.f32.mrb[23].mxu1  ;;  %866 = vmatpush1.bf16.msra.mxu0 %v705_v30  ;;  %v661_v42 = vmax.f32 %v589_v34, 0.0 }
 0x1f1   :  { %v595_v41 = vadd.f32 %v594_v40, %v434_v35  ;;  %v662_v45 = vmax.f32 %v591_v36, 0.0  ;;  %v474_v36 = vpop.permute.xlu1 %473 }
 0x1f2   :  { %v663_v44 = vmax.f32 %v593_v39, 0.0 }
 0x1f3   :  { %v664_v46 = vmax.f32 %v595_v41, 0.0 }
 0x1f4   :  { %v707_v7 = vpack.c.bf16 %v663_v44, %v661_v42 }
 0x1f5   :  { %v708_v48 = vpack.c.bf16 %v664_v46, %v662_v45  ;;  %v598_v49 = vpop.f32.mrb[24].mxu1 }
 0x1f6   :  { %v599_v50 = vadd.f32 %v598_v49, %v439_v47  ;;  %v600_v51 = vpop.f32.mrb[25].mxu1 }
 0x1f7   :  { %v601_v53 = vadd.f32 %v600_v51, %v439_v47  ;;  %v602_v54 = vpop.f32.mrb[26].mxu1  ;;  %867 = vmatprep.subr.bf16.mxu0 %v708_v48  ;;  %v479_v48 = vpop.permute.xlu0 %478 }
 0x1f8   :  { %v603_v55 = vadd.f32 %v602_v54, %v444_v52  ;;  %v604_v56 = vpop.f32.mrb[27].mxu1  ;;  %868 = vmatpush1.bf16.msra.mxu0 %v707_v7  ;;  %v665_v58 = vmax.f32 %v599_v50, 0.0 }
 0x1f9   :  { %v605_v57 = vadd.f32 %v604_v56, %v444_v52  ;;  %v666_v60 = vmax.f32 %v601_v53, 0.0  ;;  %v484_v53 = vpop.permute.xlu1 %483 }
 0x1fa   :  { %v667_v59 = vmax.f32 %v603_v55, 0.0 }
 0x1fb   :  { %v668_v61 = vmax.f32 %v605_v57, 0.0 }
 0x1fc   :  { %v709_v62 = vpack.c.bf16 %v667_v59, %v665_v58 }
 0x1fd   :  { %v710_v0 = vpack.c.bf16 %v668_v61, %v666_v60  ;;  %v608_v8 = vpop.f32.mrb[28].mxu1 }
 0x1fe   :  { %v609_v1 = vadd.f32 %v608_v8, %v449_v63  ;;  %v610_v2 = vpop.f32.mrb[29].mxu1 }
 0x1ff   :  { %v611_v10 = vadd.f32 %v610_v2, %v449_v63  ;;  %v612_v12 = vpop.f32.mrb[30].mxu1  ;;  %869 = vmatprep.subr.bf16.mxu0 %v710_v0  ;;  %v489_v0 = vpop.permute.xlu0 %488 }
 0x200   :  { %v613_v9 = vadd.f32 %v612_v12, %v454_v4  ;;  %v614_v43 = vpop.f32.mrb[31].mxu1  ;;  %870 = vmatpush1.bf16.msra.mxu0 %v709_v62  ;;  %v669_v11 = vmax.f32 %v609_v1, 0.0 }
 0x201   :  { %v615_v38 = vadd.f32 %v614_v43, %v454_v4  ;;  %v670_v14 = vmax.f32 %v611_v10, 0.0  ;;  %v494_v10 = vpop.permute.xlu1 %493 }
 0x202   :  { %v671_v13 = vmax.f32 %v613_v9, 0.0 }
 0x203   :  { %v672_v15 = vmax.f32 %v615_v38, 0.0 }
 0x204   :  { %v711_v16 = vpack.c.bf16 %v671_v13, %v669_v11 }
 0x205   :  { %v712_v17 = vpack.c.bf16 %v672_v15, %v670_v14  ;;  %v618_v18 = vpop.f32.mrb[32].mxu1 }
 0x206   :  { %v619_v19 = vadd.f32 %v618_v18, %v459_v5  ;;  %v620_v20 = vpop.f32.mrb[33].mxu1  ;;  %v1266_v18 = vld [vmem:[%s1646_s5] sm:$0xff]  }
 0x207   :  { %v621_v22 = vadd.f32 %v620_v20, %v459_v5  ;;  %v622_v23 = vpop.f32.mrb[34].mxu1  ;;  %871 = vmatprep.subr.bf16.mxu0 %v712_v17  ;;  %v1268_v20 = vld [vmem:[%s1646_s5 + $0x10] sm:$0xff]  }
 0x208   :  { %v623_v24 = vadd.f32 %v622_v23, %v464_v21  ;;  %v624_v25 = vpop.f32.mrb[35].mxu1  ;;  %872 = vmatpush1.bf16.msra.mxu0 %v711_v16  ;;  %v673_v27 = vmax.f32 %v619_v19, 0.0  ;;  %v1267_v19 = vld [vmem:[%s1646_s5 + $0x8] sm:$0xff]  }
 0x209   :  { %v625_v26 = vadd.f32 %v624_v25, %v464_v21  ;;  %v674_v29 = vmax.f32 %v621_v22, 0.0  ;;  %v1269_v21 = vld [vmem:[%s1646_s5 + $0x18] sm:$0xff]   ;;  %v1270_v22 = vld [vmem:[%s1646_s5 + $0x20] sm:$0xff]   ;;  %v1271_v23 = vld [vmem:[%s1646_s5 + $0x28] sm:$0xff]  }
 0x20a   :  { %v675_v28 = vmax.f32 %v623_v24, 0.0  ;;  %v1272_v24 = vld [vmem:[%s1646_s5 + $0x30] sm:$0xff]   ;;  %v1273_v25 = vld [vmem:[%s1646_s5 + $0x38] sm:$0xff]  }
 0x20b   :  { %v676_v30 = vmax.f32 %v625_v26, 0.0  ;;  %v740_v26 = vpop.permute.xlu0 %739 }
 0x20c   :  { %v713_v31 = vpack.c.bf16 %v675_v28, %v673_v27 }
 0x20d   :  { %v714_v33 = vpack.c.bf16 %v676_v30, %v674_v29  ;;  %v628_v34 = vpop.f32.mrb[36].mxu1  ;;  %v745_v30 = vpop.permute.xlu1 %744 }
 0x20e   :  { %v629_v6 = vadd.f32 %v628_v34, %v469_v32  ;;  %v630_v35 = vpop.f32.mrb[37].mxu1 }
 0x20f   :  { %v631_v37 = vadd.f32 %v630_v35, %v469_v32  ;;  %v632_v39 = vpop.f32.mrb[38].mxu1  ;;  %873 = vmatprep.subr.bf16.mxu0 %v714_v33 }
 0x210   :  { %v633_v40 = vadd.f32 %v632_v39, %v474_v36  ;;  %v634_v41 = vpop.f32.mrb[39].mxu1  ;;  %874 = vmatpush1.bf16.msra.mxu0 %v713_v31  ;;  %v677_v44 = vmax.f32 %v629_v6, 0.0 }
 0x211   :  { %v635_v42 = vadd.f32 %v634_v41, %v474_v36  ;;  %v678_v46 = vmax.f32 %v631_v37, 0.0 }
 0x212   :  { %v679_v45 = vmax.f32 %v633_v40, 0.0 }
 0x213   :  { %v680_v7 = vmax.f32 %v635_v42, 0.0 }
 0x214   :  { %v715_v47 = vpack.c.bf16 %v679_v45, %v677_v44  ;;  %v750_v44 = vpop.permute.xlu0 %749 }
 0x215   :  { %v716_v49 = vpack.c.bf16 %v680_v7, %v678_v46  ;;  %v638_v50 = vpop.f32.mrb[40].mxu1 }
 0x216   :  { %v639_v51 = vadd.f32 %v638_v50, %v479_v48  ;;  %v640_v52 = vpop.f32.mrb[41].mxu1 }
 0x217   :  { %v641_v54 = vadd.f32 %v640_v52, %v479_v48  ;;  %v642_v55 = vpop.f32.mrb[42].mxu1  ;;  %875 = vmatprep.subr.bf16.mxu0 %v716_v49 }
 0x218   :  { %v643_v56 = vadd.f32 %v642_v55, %v484_v53  ;;  %v644_v57 = vpop.f32.mrb[43].mxu1  ;;  %876 = vmatpush1.bf16.msra.mxu0 %v715_v47  ;;  %v681_v59 = vmax.f32 %v639_v51, 0.0  ;;  %v755_v51 = vpop.permute.xlu1 %754 }
 0x219   :  { %v645_v58 = vadd.f32 %v644_v57, %v484_v53  ;;  %v682_v61 = vmax.f32 %v641_v54, 0.0 }
 0x21a   :  { %v683_v60 = vmax.f32 %v643_v56, 0.0 }
 0x21b   :  { %v684_v62 = vmax.f32 %v645_v58, 0.0 }
 0x21c   :  { %v717_v63 = vpack.c.bf16 %v683_v60, %v681_v59 }
 0x21d   :  { %v718_v8 = vpack.c.bf16 %v684_v62, %v682_v61  ;;  %v648_v1 = vpop.f32.mrb[44].mxu1 }
 0x21e   :  { %v649_v2 = vadd.f32 %v648_v1, %v489_v0  ;;  %v650_v4 = vpop.f32.mrb[45].mxu1 }
 0x21f   :  { %v651_v12 = vadd.f32 %v650_v4, %v489_v0  ;;  %v652_v9 = vpop.f32.mrb[46].mxu1  ;;  %877 = vmatprep.subr.bf16.mxu0 %v718_v8 }
 0x220   :  { %v653_v43 = vadd.f32 %v652_v9, %v494_v10  ;;  %v654_v38 = vpop.f32.mrb[47].mxu1  ;;  %878 = vmatpush1.bf16.msra.mxu0 %v717_v63  ;;  %v685_v13 = vmax.f32 %v649_v2, 0.0 }
 0x221   :  { %v655_v11 = vadd.f32 %v654_v38, %v494_v10  ;;  %v686_v15 = vmax.f32 %v651_v12, 0.0 }
 0x222   :  { %v687_v14 = vmax.f32 %v653_v43, 0.0 }
 0x223   :  { %v688_v16 = vmax.f32 %v655_v11, 0.0  ;;  %v760_v11 = vpop.permute.xlu0 %759 }
 0x224   :  { %v719_v5 = vpack.c.bf16 %v687_v14, %v685_v13 }
 0x225   :  { %v720_v17 = vpack.c.bf16 %v688_v16, %v686_v15 }
 0x227   :  { %879 = vmatprep.subr.bf16.mxu0 %v720_v17 }
 0x228   :  { %880 = vmatpush1.bf16.msra.mxu0 %v719_v5 }
 0x22b   :  { %898 = vmatmul.mubr.bf16.vlgmr.msra.gmra.mrb[16].mxu0 %v1266_v18 }
 0x22c   :  { %907 = vmatprep.mubr.bf16.mxu0 %v1282_v3 }
 0x233   :  { %908 = vmatmul.mubr.bf16.gmra.mrb[20].mxu0 %v1267_v19 }
 0x234   :  { %917 = vmatprep.mubr.bf16.mxu0 %v1282_v3 }
 0x23b   :  { %918 = vmatmul.mubr.bf16.gmra.mrb[24].mxu0 %v1268_v20  ;;  %v765_v20 = vpop.permute.xlu1 %764 }
 0x23c   :  { %927 = vmatprep.mubr.bf16.mxu0 %v1282_v3 }
 0x243   :  { %928 = vmatmul.mubr.bf16.gmra.mrb[28].mxu0 %v1269_v21 }
 0x244   :  { %937 = vmatprep.mubr.bf16.mxu0 %v1282_v3 }
 0x24b   :  { %938 = vmatmul.mubr.bf16.gmra.mrb[32].mxu0 %v1270_v22 }
 0x24c   :  { %947 = vmatprep.mubr.bf16.mxu0 %v1282_v3 }
 0x253   :  { %948 = vmatmul.mubr.bf16.gmra.mrb[36].mxu0 %v1271_v23 }
 0x254   :  { %957 = vmatprep.mubr.bf16.mxu0 %v1282_v3 }
 0x25b   :  { %958 = vmatmul.mubr.bf16.gmra.mrb[40].mxu0 %v1272_v24 }
 0x25c   :  { %967 = vmatprep.mubr.bf16.mxu0 %v1282_v3 }
 0x263   :  { %968 = vmatmul.mubr.bf16.gmra.mrb[44].mxu0 %v1273_v25 }
 0x2fe   :  { %v899_v27 = vpop.f32.mrb[16].mxu0 }
 0x2ff   :  { %v900_v28 = vadd.f32 %v899_v27, %v740_v26  ;;  %v901_v29 = vpop.f32.mrb[17].mxu0 }
 0x300   :  { %v902_v31 = vadd.f32 %v901_v29, %v740_v26  ;;  %v903_v32 = vpop.f32.mrb[18].mxu0 }
 0x301   :  { %v978_v33 = vadd.f32 3.0, %v900_v28  ;;  %v904_v34 = vadd.f32 %v903_v32, %v745_v30  ;;  %v905_v6 = vpop.f32.mrb[19].mxu0 }
 0x302   :  { %v979_v35 = vadd.f32 3.0, %v902_v31  ;;  %v906_v36 = vadd.f32 %v905_v6, %v745_v30 }
 0x303   :  { %v1010_v37 = vmax.f32 %v978_v33, 0.0  ;;  %v980_v39 = vadd.f32 3.0, %v904_v34 }
 0x304   :  { %v1011_v3 = vmax.f32 %v979_v35, 0.0  ;;  %v981_v40 = vadd.f32 3.0, %v906_v36 }
 0x305   :  { %v1042_v41 = vmin.f32 %v1010_v37, 6.0  ;;  %v1012_v42 = vmax.f32 %v980_v39, 0.0 }
 0x306   :  { %v1043_v45 = vmin.f32 %v1011_v3, 6.0  ;;  %v1013_v46 = vmax.f32 %v981_v40, 0.0  ;;  %v909_v7 = vpop.f32.mrb[20].mxu0 }
 0x307   :  { %v1074_v47 = vmul.f32 %v1042_v41, %v900_v28  ;;  %v1044_v48 = vmin.f32 %v1012_v42, 6.0  ;;  %v910_v49 = vadd.f32 %v909_v7, %v750_v44  ;;  %v911_v50 = vpop.f32.mrb[21].mxu0  ;;  %v770_v42 = vpop.permute.xlu0 %769 }
 0x308   :  { %v1075_v52 = vmul.f32 %v1043_v45, %v902_v31  ;;  %v1045_v53 = vmin.f32 %v1013_v46, 6.0  ;;  %v912_v54 = vadd.f32 %v911_v50, %v750_v44  ;;  %v913_v55 = vpop.f32.mrb[22].mxu0 }
 0x309   :  { %v1076_v56 = vmul.f32 %v1044_v48, %v904_v34  ;;  %v982_v57 = vadd.f32 3.0, %v910_v49  ;;  %v914_v58 = vadd.f32 %v913_v55, %v755_v51  ;;  %v915_v59 = vpop.f32.mrb[23].mxu0  ;;  %v1106_v63 = vmul.f32 0.16666667, %v1074_v47 }
 0x30a   :  { %v1077_v60 = vmul.f32 %v1045_v53, %v906_v36  ;;  %v983_v61 = vadd.f32 3.0, %v912_v54  ;;  %v916_v62 = vadd.f32 %v915_v59, %v755_v51  ;;  %v1107_v2 = vmul.f32 0.16666667, %v1075_v52  ;;  %v775_v51 = vpop.permute.xlu1 %774 }
 0x30b   :  { %v1108_v0 = vmul.f32 0.16666667, %v1076_v56  ;;  %v1014_v8 = vmax.f32 %v982_v57, 0.0  ;;  %v984_v1 = vadd.f32 3.0, %v914_v58 }
 0x30c   :  { %v1109_v4 = vmul.f32 0.16666667, %v1077_v60  ;;  %v1015_v10 = vmax.f32 %v983_v61, 0.0  ;;  %v985_v12 = vadd.f32 3.0, %v916_v62 }
 0x30d   :  { %v1139_v9 = vpack.c.bf16 %v1108_v0, %v1106_v63  ;;  %v1046_v43 = vmin.f32 %v1014_v8, 6.0  ;;  %v1016_v38 = vmax.f32 %v984_v1, 0.0 }
 0x30e   :  { %v1047_v13 = vmin.f32 %v1015_v10, 6.0  ;;  %v1017_v14 = vmax.f32 %v985_v12, 0.0  ;;  %v919_v15 = vpop.f32.mrb[24].mxu0  ;;  %v1140_v16 = vpack.c.bf16 %v1109_v4, %v1107_v2 }
 0x30f   :  { %v1078_v5 = vmul.f32 %v1046_v43, %v910_v49  ;;  %v1048_v17 = vmin.f32 %v1016_v38, 6.0  ;;  %v920_v18 = vadd.f32 %v919_v15, %v760_v11  ;;  %v921_v19 = vpop.f32.mrb[25].mxu0 }
 0x310   :  { %v1079_v21 = vmul.f32 %v1047_v13, %v912_v54  ;;  %v1049_v22 = vmin.f32 %v1017_v14, 6.0  ;;  %v922_v23 = vadd.f32 %v921_v19, %v760_v11  ;;  %v923_v24 = vpop.f32.mrb[26].mxu0  ;;  %1161 = vmatprep.subr.bf16.mxu1 %v1140_v16  ;;  %v780_v11 = vpop.permute.xlu0 %779 }
 0x311   :  { %v1080_v25 = vmul.f32 %v1048_v17, %v914_v58  ;;  %v986_v26 = vadd.f32 3.0, %v920_v18  ;;  %v924_v27 = vadd.f32 %v923_v24, %v765_v20  ;;  %v925_v28 = vpop.f32.mrb[27].mxu0  ;;  %1162 = vmatpush1.bf16.msra.mxu1 %v1139_v9  ;;  %v1110_v32 = vmul.f32 0.16666667, %v1078_v5 }
 0x312   :  { %v1081_v29 = vmul.f32 %v1049_v22, %v916_v62  ;;  %v987_v30 = vadd.f32 3.0, %v922_v23  ;;  %v926_v31 = vadd.f32 %v925_v28, %v765_v20  ;;  %v1111_v35 = vmul.f32 0.16666667, %v1079_v21  ;;  %v785_v20 = vpop.permute.xlu1 %784 }
 0x313   :  { %v1112_v33 = vmul.f32 0.16666667, %v1080_v25  ;;  %v1018_v34 = vmax.f32 %v986_v26, 0.0  ;;  %v988_v6 = vadd.f32 3.0, %v924_v27 }
 0x314   :  { %v1113_v36 = vmul.f32 0.16666667, %v1081_v29  ;;  %v1019_v37 = vmax.f32 %v987_v30, 0.0  ;;  %v989_v39 = vadd.f32 3.0, %v926_v31 }
 0x315   :  { %v1141_v3 = vpack.c.bf16 %v1112_v33, %v1110_v32  ;;  %v1050_v40 = vmin.f32 %v1018_v34, 6.0  ;;  %v1020_v41 = vmax.f32 %v988_v6, 0.0 }
 0x316   :  { %v1051_v44 = vmin.f32 %v1019_v37, 6.0  ;;  %v1021_v45 = vmax.f32 %v989_v39, 0.0  ;;  %v929_v46 = vpop.f32.mrb[28].mxu0  ;;  %v1142_v7 = vpack.c.bf16 %v1113_v36, %v1111_v35 }
 0x317   :  { %v1082_v47 = vmul.f32 %v1050_v40, %v920_v18  ;;  %v1052_v48 = vmin.f32 %v1020_v41, 6.0  ;;  %v930_v49 = vadd.f32 %v929_v46, %v770_v42  ;;  %v931_v50 = vpop.f32.mrb[29].mxu0 }
 0x318   :  { %v1083_v52 = vmul.f32 %v1051_v44, %v922_v23  ;;  %v1053_v53 = vmin.f32 %v1021_v45, 6.0  ;;  %v932_v54 = vadd.f32 %v931_v50, %v770_v42  ;;  %v933_v55 = vpop.f32.mrb[30].mxu0  ;;  %1163 = vmatprep.subr.bf16.mxu1 %v1142_v7  ;;  %v790_v42 = vpop.permute.xlu0 %789 }
 0x319   :  { %v1084_v56 = vmul.f32 %v1052_v48, %v924_v27  ;;  %v990_v57 = vadd.f32 3.0, %v930_v49  ;;  %v934_v58 = vadd.f32 %v933_v55, %v775_v51  ;;  %v935_v59 = vpop.f32.mrb[31].mxu0  ;;  %1164 = vmatpush1.bf16.msra.mxu1 %v1141_v3  ;;  %v1114_v63 = vmul.f32 0.16666667, %v1082_v47 }
 0x31a   :  { %v1085_v60 = vmul.f32 %v1053_v53, %v926_v31  ;;  %v991_v61 = vadd.f32 3.0, %v932_v54  ;;  %v936_v62 = vadd.f32 %v935_v59, %v775_v51  ;;  %v1115_v2 = vmul.f32 0.16666667, %v1083_v52  ;;  %v795_v51 = vpop.permute.xlu1 %794 }
 0x31b   :  { %v1116_v0 = vmul.f32 0.16666667, %v1084_v56  ;;  %v1022_v8 = vmax.f32 %v990_v57, 0.0  ;;  %v992_v1 = vadd.f32 3.0, %v934_v58 }
 0x31c   :  { %v1117_v4 = vmul.f32 0.16666667, %v1085_v60  ;;  %v1023_v10 = vmax.f32 %v991_v61, 0.0  ;;  %v993_v12 = vadd.f32 3.0, %v936_v62 }
 0x31d   :  { %v1143_v9 = vpack.c.bf16 %v1116_v0, %v1114_v63  ;;  %v1054_v43 = vmin.f32 %v1022_v8, 6.0  ;;  %v1024_v38 = vmax.f32 %v992_v1, 0.0 }
 0x31e   :  { %v1055_v13 = vmin.f32 %v1023_v10, 6.0  ;;  %v1025_v14 = vmax.f32 %v993_v12, 0.0  ;;  %v939_v15 = vpop.f32.mrb[32].mxu0  ;;  %v1144_v16 = vpack.c.bf16 %v1117_v4, %v1115_v2 }
 0x31f   :  { %v1086_v5 = vmul.f32 %v1054_v43, %v930_v49  ;;  %v1056_v17 = vmin.f32 %v1024_v38, 6.0  ;;  %v940_v18 = vadd.f32 %v939_v15, %v780_v11  ;;  %v941_v19 = vpop.f32.mrb[33].mxu0 }
 0x320   :  { %v1087_v21 = vmul.f32 %v1055_v13, %v932_v54  ;;  %v1057_v22 = vmin.f32 %v1025_v14, 6.0  ;;  %v942_v23 = vadd.f32 %v941_v19, %v780_v11  ;;  %v943_v24 = vpop.f32.mrb[34].mxu0  ;;  %1165 = vmatprep.subr.bf16.mxu1 %v1144_v16  ;;  %v800_v11 = vpop.permute.xlu0 %799 }
 0x321   :  { %v1088_v25 = vmul.f32 %v1056_v17, %v934_v58  ;;  %v994_v26 = vadd.f32 3.0, %v940_v18  ;;  %v944_v27 = vadd.f32 %v943_v24, %v785_v20  ;;  %v945_v28 = vpop.f32.mrb[35].mxu0  ;;  %1166 = vmatpush1.bf16.msra.mxu1 %v1143_v9  ;;  %v1118_v32 = vmul.f32 0.16666667, %v1086_v5 }
 0x322   :  { %v1089_v29 = vmul.f32 %v1057_v22, %v936_v62  ;;  %v995_v30 = vadd.f32 3.0, %v942_v23  ;;  %v946_v31 = vadd.f32 %v945_v28, %v785_v20  ;;  %v1119_v35 = vmul.f32 0.16666667, %v1087_v21  ;;  %v805_v20 = vpop.permute.xlu1 %804 }
 0x323   :  { %v1120_v33 = vmul.f32 0.16666667, %v1088_v25  ;;  %v1026_v34 = vmax.f32 %v994_v26, 0.0  ;;  %v996_v6 = vadd.f32 3.0, %v944_v27 }
 0x324   :  { %v1121_v36 = vmul.f32 0.16666667, %v1089_v29  ;;  %v1027_v37 = vmax.f32 %v995_v30, 0.0  ;;  %v997_v39 = vadd.f32 3.0, %v946_v31 }
 0x325   :  { %v1145_v3 = vpack.c.bf16 %v1120_v33, %v1118_v32  ;;  %v1058_v40 = vmin.f32 %v1026_v34, 6.0  ;;  %v1028_v41 = vmax.f32 %v996_v6, 0.0 }
 0x326   :  { %v1059_v44 = vmin.f32 %v1027_v37, 6.0  ;;  %v1029_v45 = vmax.f32 %v997_v39, 0.0  ;;  %v949_v46 = vpop.f32.mrb[36].mxu0  ;;  %v1146_v7 = vpack.c.bf16 %v1121_v36, %v1119_v35 }
 0x327   :  { %v1090_v47 = vmul.f32 %v1058_v40, %v940_v18  ;;  %v1060_v48 = vmin.f32 %v1028_v41, 6.0  ;;  %v950_v49 = vadd.f32 %v949_v46, %v790_v42  ;;  %v951_v50 = vpop.f32.mrb[37].mxu0 }
 0x328   :  { %v1091_v52 = vmul.f32 %v1059_v44, %v942_v23  ;;  %v1061_v53 = vmin.f32 %v1029_v45, 6.0  ;;  %v952_v54 = vadd.f32 %v951_v50, %v790_v42  ;;  %v953_v55 = vpop.f32.mrb[38].mxu0  ;;  %1167 = vmatprep.subr.bf16.mxu1 %v1146_v7  ;;  %v810_v42 = vpop.permute.xlu0 %809 }
 0x329   :  { %v1092_v56 = vmul.f32 %v1060_v48, %v944_v27  ;;  %v998_v57 = vadd.f32 3.0, %v950_v49  ;;  %v954_v58 = vadd.f32 %v953_v55, %v795_v51  ;;  %v955_v59 = vpop.f32.mrb[39].mxu0  ;;  %1168 = vmatpush1.bf16.msra.mxu1 %v1145_v3  ;;  %v1122_v63 = vmul.f32 0.16666667, %v1090_v47 }
 0x32a   :  { %v1093_v60 = vmul.f32 %v1061_v53, %v946_v31  ;;  %v999_v61 = vadd.f32 3.0, %v952_v54  ;;  %v956_v62 = vadd.f32 %v955_v59, %v795_v51  ;;  %v1123_v2 = vmul.f32 0.16666667, %v1091_v52  ;;  %v815_v51 = vpop.permute.xlu1 %814 }
 0x32b   :  { %v1124_v0 = vmul.f32 0.16666667, %v1092_v56  ;;  %v1030_v8 = vmax.f32 %v998_v57, 0.0  ;;  %v1000_v1 = vadd.f32 3.0, %v954_v58 }
 0x32c   :  { %v1125_v4 = vmul.f32 0.16666667, %v1093_v60  ;;  %v1031_v10 = vmax.f32 %v999_v61, 0.0  ;;  %v1001_v12 = vadd.f32 3.0, %v956_v62 }
 0x32d   :  { %v1147_v9 = vpack.c.bf16 %v1124_v0, %v1122_v63  ;;  %v1062_v43 = vmin.f32 %v1030_v8, 6.0  ;;  %v1032_v38 = vmax.f32 %v1000_v1, 0.0 }
 0x32e   :  { %v1063_v13 = vmin.f32 %v1031_v10, 6.0  ;;  %v1033_v14 = vmax.f32 %v1001_v12, 0.0  ;;  %v959_v15 = vpop.f32.mrb[40].mxu0  ;;  %v1148_v16 = vpack.c.bf16 %v1125_v4, %v1123_v2 }
 0x32f   :  { %v1094_v5 = vmul.f32 %v1062_v43, %v950_v49  ;;  %v1064_v17 = vmin.f32 %v1032_v38, 6.0  ;;  %v960_v18 = vadd.f32 %v959_v15, %v800_v11  ;;  %v961_v19 = vpop.f32.mrb[41].mxu0 }
 0x330   :  { %v1095_v21 = vmul.f32 %v1063_v13, %v952_v54  ;;  %v1065_v22 = vmin.f32 %v1033_v14, 6.0  ;;  %v962_v23 = vadd.f32 %v961_v19, %v800_v11  ;;  %v963_v24 = vpop.f32.mrb[42].mxu0  ;;  %1169 = vmatprep.subr.bf16.mxu1 %v1148_v16 }
 0x331   :  { %v1096_v25 = vmul.f32 %v1064_v17, %v954_v58  ;;  %v1002_v26 = vadd.f32 3.0, %v960_v18  ;;  %v964_v27 = vadd.f32 %v963_v24, %v805_v20  ;;  %v965_v28 = vpop.f32.mrb[43].mxu0  ;;  %1170 = vmatpush1.bf16.msra.mxu1 %v1147_v9  ;;  %v1126_v32 = vmul.f32 0.16666667, %v1094_v5 }
 0x332   :  { %v1097_v29 = vmul.f32 %v1065_v22, %v956_v62  ;;  %v1003_v30 = vadd.f32 3.0, %v962_v23  ;;  %v966_v31 = vadd.f32 %v965_v28, %v805_v20  ;;  %v1127_v35 = vmul.f32 0.16666667, %v1095_v21 }
 0x333   :  { %v1128_v33 = vmul.f32 0.16666667, %v1096_v25  ;;  %v1034_v34 = vmax.f32 %v1002_v26, 0.0  ;;  %v1004_v6 = vadd.f32 3.0, %v964_v27  ;;  %v1138_v26 = vld [vmem:[%s1647_s7] sm:$0xf] }
 0x334   :  { %v1129_v36 = vmul.f32 0.16666667, %v1097_v29  ;;  %v1035_v37 = vmax.f32 %v1003_v30, 0.0  ;;  %v1005_v39 = vadd.f32 3.0, %v966_v31 }
 0x335   :  { %v1149_v3 = vpack.c.bf16 %v1128_v33, %v1126_v32  ;;  %v1066_v40 = vmin.f32 %v1034_v34, 6.0  ;;  %v1036_v41 = vmax.f32 %v1004_v6, 0.0 }
 0x336   :  { %v1067_v44 = vmin.f32 %v1035_v37, 6.0  ;;  %v1037_v45 = vmax.f32 %v1005_v39, 0.0  ;;  %v969_v46 = vpop.f32.mrb[44].mxu0  ;;  %v1150_v7 = vpack.c.bf16 %v1129_v36, %v1127_v35 }
 0x337   :  { %v1098_v47 = vmul.f32 %v1066_v40, %v960_v18  ;;  %v1068_v48 = vmin.f32 %v1036_v41, 6.0  ;;  %v970_v49 = vadd.f32 %v969_v46, %v810_v42  ;;  %v971_v50 = vpop.f32.mrb[45].mxu0 }
 0x338   :  { %v1099_v52 = vmul.f32 %v1067_v44, %v962_v23  ;;  %v1069_v53 = vmin.f32 %v1037_v45, 6.0  ;;  %v972_v54 = vadd.f32 %v971_v50, %v810_v42  ;;  %v973_v55 = vpop.f32.mrb[46].mxu0  ;;  %1171 = vmatprep.subr.bf16.mxu1 %v1150_v7 }
 0x339   :  { %v1100_v56 = vmul.f32 %v1068_v48, %v964_v27  ;;  %v1006_v57 = vadd.f32 3.0, %v970_v49  ;;  %v974_v58 = vadd.f32 %v973_v55, %v815_v51  ;;  %v975_v59 = vpop.f32.mrb[47].mxu0  ;;  %1172 = vmatpush1.bf16.msra.mxu1 %v1149_v3  ;;  %v1130_v63 = vmul.f32 0.16666667, %v1098_v47  ;;  %v1159_v27 = vpop.permute.xlu0 %1158 }
 0x33a   :  { %v1101_v60 = vmul.f32 %v1069_v53, %v966_v31  ;;  %v1007_v61 = vadd.f32 3.0, %v972_v54  ;;  %v976_v62 = vadd.f32 %v975_v59, %v815_v51  ;;  %v1131_v2 = vmul.f32 0.16666667, %v1099_v52 }
 0x33b   :  { %v1132_v0 = vmul.f32 0.16666667, %v1100_v56  ;;  %v1038_v8 = vmax.f32 %v1006_v57, 0.0  ;;  %v1008_v1 = vadd.f32 3.0, %v974_v58 }
 0x33c   :  { %v1133_v4 = vmul.f32 0.16666667, %v1101_v60  ;;  %v1039_v10 = vmax.f32 %v1007_v61, 0.0  ;;  %v1009_v12 = vadd.f32 3.0, %v976_v62 }
 0x33d   :  { %v1151_v9 = vpack.c.bf16 %v1132_v0, %v1130_v63  ;;  %v1070_v43 = vmin.f32 %v1038_v8, 6.0  ;;  %v1040_v38 = vmax.f32 %v1008_v1, 0.0 }
 0x33e   :  { %v1071_v11 = vmin.f32 %v1039_v10, 6.0  ;;  %v1041_v13 = vmax.f32 %v1009_v12, 0.0  ;;  %v1152_v14 = vpack.c.bf16 %v1133_v4, %v1131_v2 }
 0x33f   :  { %v1102_v15 = vmul.f32 %v1070_v43, %v970_v49  ;;  %v1072_v16 = vmin.f32 %v1040_v38, 6.0 }
 0x340   :  { %v1103_v5 = vmul.f32 %v1071_v11, %v972_v54  ;;  %v1073_v17 = vmin.f32 %v1041_v13, 6.0  ;;  %1173 = vmatprep.subr.bf16.mxu1 %v1152_v14 }
 0x341   :  { %v1104_v18 = vmul.f32 %v1072_v16, %v974_v58  ;;  %1174 = vmatpush1.bf16.msra.mxu1 %v1151_v9  ;;  %v1134_v20 = vmul.f32 0.16666667, %v1102_v15 }
 0x342   :  { %v1105_v19 = vmul.f32 %v1073_v17, %v976_v62  ;;  %v1135_v22 = vmul.f32 0.16666667, %v1103_v5 }
 0x343   :  { %v1136_v21 = vmul.f32 0.16666667, %v1104_v18 }
 0x344   :  { %v1137_v23 = vmul.f32 0.16666667, %v1105_v19 }
 0x345   :  { %v1153_v24 = vpack.c.bf16 %v1136_v21, %v1134_v20 }
 0x346   :  { %v1154_v25 = vpack.c.bf16 %v1137_v23, %v1135_v22 }
 0x348   :  { %1175 = vmatprep.subr.bf16.mxu1 %v1154_v25 }
 0x349   :  { %1176 = vmatpush1.bf16.msra.mxu1 %v1153_v24 }
 0x34c   :  { %1194 = vmatmul.mubr.bf16.vlgmr.msra.gmra.mrb[48].mxu1 %v1138_v26 }
 0x41f   :  { %v1195_v28 = vpop.f32.mrb[48].mxu1 }
 0x420   :  { %v1196_v29 = vadd.f32 %v1195_v28, %v1159_v27  ;;  %v1197_v30 = vpop.f32.mrb[49].mxu1 }
 0x421   :  { %v1198_v31 = vadd.f32 %v1197_v30, %v1159_v27  ;;  %v1199_v32 = vpop.f32.mrb[50].mxu1 }
 0x422   :  { %1274 = vtanh.f32 %v1196_v29  ;;  %v1200_v33 = vpop.f32.mrb[51].mxu1 }
 0x423   :  { %1276 = vtanh.f32 %v1198_v31 }
 0x42c   :  { %v1275_v34 = vpop.eup %1274 }
 0x42d   :  { %v1277_v6 = vpop.eup %1276  ;;  %1278 = vtanh.f32 %v1275_v34 }
 0x42e   :  { %1280 = vtanh.f32 %v1277_v6 }
 0x437   :  { %v1279_v35 = vpop.eup %1278 }
 0x438   :  { %v1281_v36 = vpop.eup %1280  ;;  %1206 = vst [vmem:[%s1648_s9] sm:$0xff] %v1279_v35 }
 0x439   :  { %1207 = vst [vmem:[%s1648_s9 + $0x8] sm:$0xff] %v1281_v36 }

</bundles_post_ra>
